<compile_context>
chip_gen: v5e
topology: v5e:2x2
jax: 0.10.0
libtpu: 0.0.40
codegen_flags: <defaults>
</compile_context>

<pallas_src>
import functools
import math

import jax
import jax.numpy as jnp
from jax.experimental import pallas as pl
from jax.experimental.pallas import tpu as pltpu


_VMEM_BUDGET = 40 << 20  # leave headroom under v7x's 64 MiB physical VMEM


def _round_up(x, m):
    return ((x + m - 1) // m) * m


def _pick_bt(b):
    """Batch elements per grid step: amortize per-step overhead but keep >=2 parallel steps."""
    if b <= 2:
        return 1
    for bt in (8, 4, 2):
        if b % bt == 0 and b // bt >= 2:
            return bt
    return 1


def _vmem_estimate(bt, lp_pad, tile_h):
    bf, f32 = 2, 4
    inputs = 2 * bt * (lp_pad + tile_h) * 256 * bf           # double-buffered bf16 inputs
    weights = 2 * 2 * (256 * 384 * bf + 384 * f32)           # double-buffered packed weights + biases
    output = 2 * bt * tile_h * 256 * f32                     # double-buffered fp32 output
    scratch = bt * lp_pad * 384 * bf                         # cached key|value (bf16)
    temps = bt * (lp_pad * 384 * f32                         # fp32 key|value before downcast
                  + tile_h * 384 * f32                       # qkey|qvalue
                  + 3 * tile_h * lp_pad * f32                # scores / exp / mask temporaries
                  + tile_h * 256 * f32)                      # unnormalized A@V
    return inputs + weights + output + scratch + temps


# ----------------------------------------------------------------------------
# Fused kernel: packed 1x1 convs + cross attention + residual
# ----------------------------------------------------------------------------
def _mvt_kernel(xp_ref, xh_ref, wkv0_ref, bkv0_ref, wkv1_ref, bkv1_ref,
                out_ref, kv_ref, *, lp_valid, inv_sqrt_k):
    bt, lp_pad, cin = xp_ref.shape
    _, th, _ = xh_ref.shape

    # --- pixel-side key|value projection: compute once per batch block (first
    # --- Lh tile) and cache in bf16 VMEM scratch for all remaining Lh tiles.
    @pl.when(pl.program_id(1) == 0)
    def _():
        xp2 = xp_ref[...].reshape(bt * lp_pad, cin)                       # bf16
        kv = jnp.dot(xp2, wkv0_ref[...],
                     preferred_element_type=jnp.float32) + bkv0_ref[...]  # fp32 accum + bias
        kv_ref[...] = kv.reshape(bt, lp_pad, 384).astype(jnp.bfloat16)

    kv = kv_ref[...]                        # (bt, lp_pad, 384) bf16
    k = kv[:, :, :128]                      # (bt, lp_pad, 128)   lane-tile aligned slice
    v = kv[:, :, 128:]                      # (bt, lp_pad, 256)

    # --- holder-side query_key|query_value projection (one packed matmul) ----
    xh2 = xh_ref[...].reshape(bt * th, cin)                               # bf16
    qkv = jnp.dot(xh2, wkv1_ref[...],
                  preferred_element_type=jnp.float32) + bkv1_ref[...]     # fp32
    qkv = qkv.reshape(bt, th, 384)
    qk = (qkv[:, :, :128] * inv_sqrt_k).astype(jnp.bfloat16)              # fold 1/sqrt(128) here
    qv = qkv[:, :, 128:]                                                  # fp32 residual branch

    # --- attention scores, fp32 softmax over the (padded) pixel axis ---------
    s = jnp.einsum('bhk,bpk->bhp', qk, k, preferred_element_type=jnp.float32)

    if lp_valid < lp_pad:                   # statically elided when no padding
        col = jax.lax.broadcasted_iota(jnp.int32, s.shape, 2)
        s = jnp.where(col < lp_valid, s, -1e30)

    m = jnp.max(s, axis=-1, keepdims=True)
    e = jnp.exp(s - m)                      # fp32, values in [0, 1]
    denom = jnp.sum(e, axis=-1, keepdims=True)

    # Deferred normalization: matmul on unnormalized probs, then one EUP reciprocal.
    out = jnp.einsum('bhp,bpc->bhc', e.astype(jnp.bfloat16), v,
                     preferred_element_type=jnp.float32)
    out = out * pl.reciprocal(denom, approx=True)

    out_ref[...] = (qv + out).astype(out_ref.dtype)


# ----------------------------------------------------------------------------
# Wrapper: PyTorch [L, 256, B] layout in, [Lh, 256, B] out
# ----------------------------------------------------------------------------
def multiview_transformer(holder, pixel_feat, params):
    wk0, bk0, wv0, bv0, wk1, bk1, wv1, bv1 = params
    lh, c, b = holder.shape
    lp = pixel_feat.shape[0]
    assert c == 256 and pixel_feat.shape[1] == 256 and pixel_feat.shape[2] == b

    # Pack key|value projections -> one (256, 384) bf16 weight per input.
    wkv0 = jnp.concatenate([wk0, wv0], axis=1).astype(jnp.bfloat16)   # (256, 384)
    bkv0 = jnp.concatenate([bk0, bv0], axis=1).astype(jnp.float32)    # (1, 384)
    wkv1 = jnp.concatenate([wk1, wv1], axis=1).astype(jnp.bfloat16)
    bkv1 = jnp.concatenate([bk1, bv1], axis=1).astype(jnp.float32)

    # [L,256,B] -> channels-last [B,L,256]; bf16 inputs (MXU-native, halves DMA).
    # TODO(synk): accept/emit [B,L,256] upstream to avoid this extra HBM transpose pass.
    xh = jnp.transpose(holder, (2, 0, 1)).astype(jnp.bfloat16)
    xp = jnp.transpose(pixel_feat, (2, 0, 1)).astype(jnp.bfloat16)

    lp_pad = _round_up(lp, 8)
    # TODO(synk): for very large Lp, add an inner "arbitrary" grid axis over Lp tiles
    # with a flash-style online softmax instead of materializing (tile_h, Lp) scores.

    bt = _pick_bt(b)
    tile_h = min(512, _round_up(lh, 8))
    while tile_h > 8 and _vmem_estimate(bt, lp_pad, tile_h) > _VMEM_BUDGET:
        tile_h = _round_up(tile_h // 2, 8)
    while bt > 1 and _vmem_estimate(bt, lp_pad, tile_h) > _VMEM_BUDGET:
        bt //= 2
    lh_pad = _round_up(lh, tile_h)

    xh = jnp.pad(xh, ((0, 0), (0, lh_pad - lh), (0, 0)))
    xp = jnp.pad(xp, ((0, 0), (0, lp_pad - lp), (0, 0)))

    kernel = functools.partial(_mvt_kernel, lp_valid=lp,
                               inv_sqrt_k=1.0 / math.sqrt(128.0))

    vmem_limit = int(min(max(1.4 * _vmem_estimate(bt, lp_pad, tile_h), 32 << 20),
                         64 << 20))

    out = pl.pallas_call(
        kernel,
        out_shape=jax.ShapeDtypeStruct((b, lh_pad, 256), jnp.float32),
        grid=(b // bt, lh_pad // tile_h),
        in_specs=[
            pl.BlockSpec((bt, lp_pad, 256), lambda i, h: (i, 0, 0)),   # pixel_feat (bf16)
            pl.BlockSpec((bt, tile_h, 256), lambda i, h: (i, h, 0)),   # holder     (bf16)
            pl.BlockSpec((256, 384), lambda i, h: (0, 0)),             # Wk0|Wv0    (bf16)
            pl.BlockSpec((1, 384), lambda i, h: (0, 0)),               # bk0|bv0    (f32)
            pl.BlockSpec((256, 384), lambda i, h: (0, 0)),             # Wk1|Wv1    (bf16)
            pl.BlockSpec((1, 384), lambda i, h: (0, 0)),               # bk1|bv1    (f32)
        ],
        out_specs=pl.BlockSpec((bt, tile_h, 256), lambda i, h: (i, h, 0)),
        scratch_shapes=[pltpu.VMEM((bt, lp_pad, 384), jnp.bfloat16)],   # cached key|value
        compiler_params=pltpu.CompilerParams(
            dimension_semantics=("parallel", "arbitrary"),
            vmem_limit_bytes=vmem_limit),
    )(xp, xh, wkv0, bkv0, wkv1, bkv1)

    out = out[:, :lh, :]                        # drop holder padding
    return jnp.transpose(out, (1, 2, 0))        # -> [Lh, 256, B] (torch output layout)


# ----------------------------------------------------------------------------
# Pure-JAX fp32 reference (for correctness check)
# ----------------------------------------------------------------------------
def multiview_transformer_ref(holder, pixel_feat, params):
    wk0, bk0, wv0, bv0, wk1, bk1, wv1, bv1 = params
    xp = jnp.transpose(pixel_feat, (2, 0, 1))          # [B, Lp, 256]
    xh = jnp.transpose(holder, (2, 0, 1))              # [B, Lh, 256]
    k = xp @ wk0 + bk0                                 # [B, Lp, 128]
    v = xp @ wv0 + bv0                                 # [B, Lp, 256]
    qk = xh @ wk1 + bk1                                # [B, Lh, 128]
    qv = xh @ wv1 + bv1                                # [B, Lh, 256]
    A = jnp.einsum('bpk,bhk->bph', k, qk) / math.sqrt(128.0)   # [B, Lp, Lh]
    A = jax.nn.softmax(A, axis=1)                      # softmax over pixel axis
    out = jnp.einsum('bpc,bph->bhc', v, A)             # [B, Lh, 256]
    return jnp.transpose(qv + out, (1, 2, 0))          # [Lh, 256, B]


# ----------------------------------------------------------------------------
# Parameters (synthetic, PyTorch Conv1d-style init; weights stored transposed
# so the kernel computes x @ W directly)
# ----------------------------------------------------------------------------
def init_params(key):
    def conv1x1(k, cin, cout):
        kw, kb = jax.random.split(k)
        bound = 1.0 / math.sqrt(cin)
        w = jax.random.uniform(kw, (cin, cout), jnp.float32, -bound, bound)
        b = jax.random.uniform(kb, (1, cout), jnp.float32, -bound, bound)
        return w, b

    k0, k1, k2, k3 = jax.random.split(key, 4)
    wk0, bk0 = conv1x1(k0, 256, 128)   # spatial_key_value_0.key_embed
    wv0, bv0 = conv1x1(k1, 256, 256)   # spatial_key_value_0.value_embed
    wk1, bk1 = conv1x1(k2, 256, 128)   # spatial_key_value_1.key_embed
    wv1, bv1 = conv1x1(k3, 256, 256)   # spatial_key_value_1.value_embed
    return (wk0, bk0, wv0, bv0, wk1, bk1, wv1, bv1)


if __name__ == "__main__":
    key = jax.random.PRNGKey(0)
    kh, kpix, kparam = jax.random.split(key, 3)

    # Channels fixed at 256 by the Conv1d layers; B = bmm batch (views),
    # Lp = pixel positions, Lh = holder positions. Lp/Lh deliberately not
    # multiples of 8 to exercise the padding mask / slicing paths.
    B, Lh, Lp, C = 2, 7, 21, 256
    holder = jax.random.normal(kh, (Lh, C, B), jnp.float32)
    pixel_feat = jax.random.normal(kpix, (Lp, C, B), jnp.float32)
    params = init_params(kparam)

    fwd = jax.jit(functools.partial(multiview_transformer, params=params))
    out = fwd(holder, pixel_feat)
    jax.block_until_ready(out)

    assert out.shape == (Lh, C, B), out.shape
    assert bool(jnp.all(jnp.isfinite(out)))
    ref = multiview_transformer_ref(holder, pixel_feat, params)
    max_err = float(jnp.max(jnp.abs(out - ref)))
    assert bool(jnp.allclose(out, ref, atol=3e-2, rtol=3e-2)), max_err
    print("KERNEL_OK")
</pallas_src>

<mosaic_0001>
module attributes {stable_mosaic.version = 11 : i64} {
  func.func @_mvt_kernel(%arg0: i32, %arg1: i32, %arg2: memref<1x24x256xbf16, #tpu.memory_space<vmem>>, %arg3: memref<1x8x256xbf16, #tpu.memory_space<vmem>>, %arg4: memref<256x384xbf16, #tpu.memory_space<vmem>>, %arg5: memref<1x384xf32, #tpu.memory_space<vmem>>, %arg6: memref<256x384xbf16, #tpu.memory_space<vmem>>, %arg7: memref<1x384xf32, #tpu.memory_space<vmem>>, %arg8: memref<1x8x256xf32, #tpu.memory_space<vmem>>, %arg9: memref<1x24x384xbf16, #tpu.memory_space<vmem>>) attributes {dimension_semantics = [#tpu.dimension_semantics<parallel>, #tpu.dimension_semantics<arbitrary>], iteration_bounds = array<i64: 2, 1>, scalar_prefetch = 0 : i64, scratch_operands = 1 : i64, tpu.core_type = #tpu.core_type<tc>, window_params = [{transform_indices = @transform_0, window_bounds = array<i64: 1, 24, 256>}, {transform_indices = @transform_1, window_bounds = array<i64: 1, 8, 256>}, {pipeline_mode = #tpu.pipeline_mode<synchronous>, transform_indices = @transform_2, window_bounds = array<i64: 256, 384>}, {pipeline_mode = #tpu.pipeline_mode<synchronous>, transform_indices = @transform_3, window_bounds = array<i64: 1, 384>}, {pipeline_mode = #tpu.pipeline_mode<synchronous>, transform_indices = @transform_4, window_bounds = array<i64: 256, 384>}, {pipeline_mode = #tpu.pipeline_mode<synchronous>, transform_indices = @transform_5, window_bounds = array<i64: 1, 384>}, {transform_indices = @transform_6, window_bounds = array<i64: 1, 8, 256>}]} {
    %c0_i32 = arith.constant 0 : i32
    %0 = arith.cmpi eq, %arg1, %c0_i32 : i32
    %1 = arith.extui %0 : i1 to i32
    %c0_i32_0 = arith.constant 0 : i32
    %2 = arith.cmpi ne, %1, %c0_i32_0 : i32
    scf.if %2 {
      %c0_19 = arith.constant 0 : index
      %c0_20 = arith.constant 0 : index
      %c0_21 = arith.constant 0 : index
      %39 = vector.load %arg2[%c0_19, %c0_20, %c0_21] : memref<1x24x256xbf16, #tpu.memory_space<vmem>>, vector<1x24x256xbf16>
      %40 = vector.shape_cast %39 : vector<1x24x256xbf16> to vector<24x256xbf16>
      %c0_22 = arith.constant 0 : index
      %c0_23 = arith.constant 0 : index
      %41 = vector.load %arg4[%c0_22, %c0_23] : memref<256x384xbf16, #tpu.memory_space<vmem>>, vector<256x384xbf16>
      %cst_24 = arith.constant dense<0.000000e+00> : vector<24x384xf32>
      %42 = tpu.matmul %40, %41, %cst_24 {dimension_numbers = #tpu.dot_dimension_numbers<[1], [0], [0], [1], [0, 0, 1, 1], [], []>} : vector<24x256xbf16>, vector<256x384xbf16>, vector<24x384xf32> -> vector<24x384xf32>
      %c0_25 = arith.constant 0 : index
      %c0_26 = arith.constant 0 : index
      %43 = vector.load %arg5[%c0_25, %c0_26] : memref<1x384xf32, #tpu.memory_space<vmem>>, vector<1x384xf32>
      %44 = vector.broadcast %43 : vector<1x384xf32> to vector<24x384xf32>
      %45 = arith.addf %42, %44 : vector<24x384xf32>
      %46 = vector.shape_cast %45 : vector<24x384xf32> to vector<1x24x384xf32>
      %47 = arith.truncf %46 : vector<1x24x384xf32> to vector<1x24x384xbf16>
      %c0_27 = arith.constant 0 : index
      %c0_28 = arith.constant 0 : index
      %c0_29 = arith.constant 0 : index
      %48 = vector.load %arg9[%c0_27, %c0_28, %c0_29] : memref<1x24x384xbf16, #tpu.memory_space<vmem>>, vector<1x24x384xbf16>
      tpu.vector_store %arg9[%c0_27, %c0_28, %c0_29], %47 {strides = array<i32>} : memref<1x24x384xbf16, #tpu.memory_space<vmem>>, vector<1x24x384xbf16>,
    } else {
    }
    %c0 = arith.constant 0 : index
    %c0_1 = arith.constant 0 : index
    %c0_2 = arith.constant 0 : index
    %3 = vector.load %arg9[%c0, %c0_1, %c0_2] : memref<1x24x384xbf16, #tpu.memory_space<vmem>>, vector<1x24x384xbf16>
    %4 = vector.extract_strided_slice %3 {offsets = [0, 0, 0], sizes = [1, 24, 128], strides = [1, 1, 1]} : vector<1x24x384xbf16> to vector<1x24x128xbf16>
    %5 = vector.extract_strided_slice %3 {offsets = [0, 0, 128], sizes = [1, 24, 256], strides = [1, 1, 1]} : vector<1x24x384xbf16> to vector<1x24x256xbf16>
    %c0_3 = arith.constant 0 : index
    %c0_4 = arith.constant 0 : index
    %c0_5 = arith.constant 0 : index
    %6 = vector.load %arg3[%c0_3, %c0_4, %c0_5] : memref<1x8x256xbf16, #tpu.memory_space<vmem>>, vector<1x8x256xbf16>
    %7 = vector.shape_cast %6 : vector<1x8x256xbf16> to vector<8x256xbf16>
    %c0_6 = arith.constant 0 : index
    %c0_7 = arith.constant 0 : index
    %8 = vector.load %arg6[%c0_6, %c0_7] : memref<256x384xbf16, #tpu.memory_space<vmem>>, vector<256x384xbf16>
    %cst = arith.constant dense<0.000000e+00> : vector<8x384xf32>
    %9 = tpu.matmul %7, %8, %cst {dimension_numbers = #tpu.dot_dimension_numbers<[1], [0], [0], [1], [0, 0, 1, 1], [], []>} : vector<8x256xbf16>, vector<256x384xbf16>, vector<8x384xf32> -> vector<8x384xf32>
    %c0_8 = arith.constant 0 : index
    %c0_9 = arith.constant 0 : index
    %10 = vector.load %arg7[%c0_8, %c0_9] : memref<1x384xf32, #tpu.memory_space<vmem>>, vector<1x384xf32>
    %11 = vector.broadcast %10 : vector<1x384xf32> to vector<8x384xf32>
    %12 = arith.addf %9, %11 : vector<8x384xf32>
    %13 = vector.shape_cast %12 : vector<8x384xf32> to vector<1x8x384xf32>
    %14 = vector.extract_strided_slice %13 {offsets = [0, 0, 0], sizes = [1, 8, 128], strides = [1, 1, 1]} : vector<1x8x384xf32> to vector<1x8x128xf32>
    %cst_10 = arith.constant 0.0883883461 : f32
    %15 = vector.broadcast %cst_10 : f32 to vector<1x8x128xf32>
    %16 = arith.mulf %14, %15 : vector<1x8x128xf32>
    %17 = arith.truncf %16 : vector<1x8x128xf32> to vector<1x8x128xbf16>
    %18 = vector.extract_strided_slice %13 {offsets = [0, 0, 128], sizes = [1, 8, 256], strides = [1, 1, 1]} : vector<1x8x384xf32> to vector<1x8x256xf32>
    "tpu.trace_start"() <{level = 10 : i32, message = "bhk,bpk->bhp"}> : () -> ()
    %cst_11 = arith.constant dense<0.000000e+00> : vector<1x8x24xf32>
    %19 = tpu.matmul %17, %4, %cst_11 {dimension_numbers = #tpu.dot_dimension_numbers<[2], [2], [1], [1], [0, 0, 0, 1, 1, 1], [0], [0]>} : vector<1x8x128xbf16>, vector<1x24x128xbf16>, vector<1x8x24xf32> -> vector<1x8x24xf32>
    "tpu.trace_stop"() : () -> ()
    %20 = tpu.iota {dimensions = array<i32: 2>} : vector<1x8x24xi32>
    %c21_i32 = arith.constant 21 : i32
    %21 = vector.broadcast %c21_i32 : i32 to vector<1x8x24xi32>
    %22 = arith.cmpi slt, %20, %21 : vector<1x8x24xi32>
    %cst_12 = arith.constant -1.000000e+30 : f32
    %23 = vector.broadcast %cst_12 : f32 to vector<1x8x24xf32>
    %24 = arith.select %22, %19, %23 : vector<1x8x24xi1>, vector<1x8x24xf32>
    %cst_13 = arith.constant dense<0xFF800000> : vector<1x8xf32>
    %25 = vector.multi_reduction <maximumf>, %24, %cst_13 [2] : vector<1x8x24xf32> to vector<1x8xf32>
    %26 = vector.shape_cast %25 : vector<1x8xf32> to vector<1x8x1xf32>
    %27 = vector.broadcast %26 : vector<1x8x1xf32> to vector<1x8x24xf32>
    %28 = arith.subf %24, %27 : vector<1x8x24xf32>
    %29 = math.exp %28 : vector<1x8x24xf32>
    %cst_14 = arith.constant dense<0.000000e+00> : vector<1x8xf32>
    %30 = vector.multi_reduction <add>, %29, %cst_14 [2] : vector<1x8x24xf32> to vector<1x8xf32>
    %31 = vector.shape_cast %30 : vector<1x8xf32> to vector<1x8x1xf32>
    %32 = arith.truncf %29 : vector<1x8x24xf32> to vector<1x8x24xbf16>
    "tpu.trace_start"() <{level = 10 : i32, message = "bhp,bpc->bhc"}> : () -> ()
    %cst_15 = arith.constant dense<0.000000e+00> : vector<1x8x256xf32>
    %33 = tpu.matmul %32, %5, %cst_15 {dimension_numbers = #tpu.dot_dimension_numbers<[2], [1], [1], [2], [0, 0, 0, 1, 1, 2], [0], [0]>} : vector<1x8x24xbf16>, vector<1x24x256xbf16>, vector<1x8x256xf32> -> vector<1x8x256xf32>
    "tpu.trace_stop"() : () -> ()
    %34 = tpu.reciprocal %31 {approx = true} : vector<1x8x1xf32> -> vector<1x8x1xf32>
    %35 = vector.broadcast %34 : vector<1x8x1xf32> to vector<1x8x256xf32>
    %36 = arith.mulf %33, %35 : vector<1x8x256xf32>
    %37 = arith.addf %18, %36 : vector<1x8x256xf32>
    %c0_16 = arith.constant 0 : index
    %c0_17 = arith.constant 0 : index
    %c0_18 = arith.constant 0 : index
    %38 = vector.load %arg8[%c0_16, %c0_17, %c0_18] : memref<1x8x256xf32, #tpu.memory_space<vmem>>, vector<1x8x256xf32>
    tpu.vector_store %arg8[%c0_16, %c0_17, %c0_18], %37 {strides = array<i32>} : memref<1x8x256xf32, #tpu.memory_space<vmem>>, vector<1x8x256xf32>,
    return
  }
  func.func @transform_0(%arg0: i32, %arg1: i32) -> (i32, i32, i32) {
    %c0_i32 = arith.constant 0 : i32
    %c0_i32_0 = arith.constant 0 : i32
    %c0_i32_1 = arith.constant 0 : i32
    return %arg0, %c0_i32, %c0_i32_0 : i32, i32, i32
  }
  func.func @transform_1(%arg0: i32, %arg1: i32) -> (i32, i32, i32) {
    %c0_i32 = arith.constant 0 : i32
    %c0_i32_0 = arith.constant 0 : i32
    return %arg0, %arg1, %c0_i32 : i32, i32, i32
  }
  func.func @transform_2(%arg0: i32, %arg1: i32) -> (i32, i32) {
    %c0_i32 = arith.constant 0 : i32
    %c0_i32_0 = arith.constant 0 : i32
    %c0_i32_1 = arith.constant 0 : i32
    return %c0_i32, %c0_i32_0 : i32, i32
  }
  func.func @transform_3(%arg0: i32, %arg1: i32) -> (i32, i32) {
    %c0_i32 = arith.constant 0 : i32
    %c0_i32_0 = arith.constant 0 : i32
    %c0_i32_1 = arith.constant 0 : i32
    return %c0_i32, %c0_i32_0 : i32, i32
  }
  func.func @transform_4(%arg0: i32, %arg1: i32) -> (i32, i32) {
    %c0_i32 = arith.constant 0 : i32
    %c0_i32_0 = arith.constant 0 : i32
    %c0_i32_1 = arith.constant 0 : i32
    return %c0_i32, %c0_i32_0 : i32, i32
  }
  func.func @transform_5(%arg0: i32, %arg1: i32) -> (i32, i32) {
    %c0_i32 = arith.constant 0 : i32
    %c0_i32_0 = arith.constant 0 : i32
    %c0_i32_1 = arith.constant 0 : i32
    return %c0_i32, %c0_i32_0 : i32, i32
  }
  func.func @transform_6(%arg0: i32, %arg1: i32) -> (i32, i32, i32) {
    %c0_i32 = arith.constant 0 : i32
    %c0_i32_0 = arith.constant 0 : i32
    return %arg0, %arg1, %c0_i32 : i32, i32, i32
  }
}

</mosaic_0001>

<bundles_post_ra>
// kernel: multiview_transformer.1
= control target key start
LH: loop header
LB: loop body
LE: loop exit
PB: predicated region body
PF: predicated region fallthrough
CT: control target
= control target key end

     0   :  { %11 = vsyncpa [#allocation4], 0  ;;  %s2316_s0 = inlined_call_operand.vmem [shape: bf16[2,24,256], index: 0, kind: input, shape index: {}]   ;;  %s2317_s1 = inlined_call_operand.vmem [shape: bf16[2,8,256], index: 1, kind: input, shape index: {}]   ;;  %s2318_s2 = inlined_call_operand.hbm [shape: bf16[256,384], index: 2, kind: input, shape index: {}]   ;;  %s2319_s3 = inlined_call_operand.vmem [shape: f32[1,384], index: 3, kind: input, shape index: {}]   ;;  %s2320_s4 = inlined_call_operand.hbm [shape: bf16[256,384], index: 4, kind: input, shape index: {}]   ;;  %s2321_s5 = inlined_call_operand.vmem [shape: f32[1,384], index: 5, kind: input, shape index: {}]   ;;  %s2322_s6 = inlined_call_operand.vmem [shape: f32[2,8,256], index: 6, kind: output, shape index: {}]  }
   0x1   :  { %12 = vsyncpa [#allocation6], 0  ;;  %s2168_s21 = smov 0   ;;  %s2170_s22 = smov 0  }
   0x2   :  { %s2172_s23 = smov 0  }
   0x3 LB: > { %s1470_s24 = sadd.s32 4294967295, %s2127_s23   ;;  %s30_s25 = sadd.s32 1, %s2123_s22  ;;  %s2127_s23 = sphi %s2172_s23, %s18_s23   ;;  %s2123_s22 = sphi %s2170_s22, %s2326_s22   ;;  %s2119_s21 = sphi %s2168_s21, %s2325_s21  }
   0x4   : > { %p32_p0 = scmp.ge.s32.totalorder %s30_s25, 2  ;;  %p1472_p1 = scmp.ge.s32.totalorder %s2127_s23, 1 }
   0x5   : > { %p201_p2 = scmp.lt.s32.totalorder %s2127_s23, 3  ;;  %p2193_p4 = scmp.eq.s32.totalorder %s1470_s24, 0 }
   0x6   : > { %s2328_s25 = smov (%p32_p0, %s30_s25), 0  ;;  %s212_s30 = sshll.u32 %s2318_s2, 4  ;;  %s213_s30 = int_to_ptr.hbm [resolvable:$true] %s212_s30 }
   0x7   : > { %p2189_p3 = pnand %p1472_p1, %p201_p2  ;;  %s2129_s7 = smov [#allocation3]  }
   0x8   : > { %s214_s8 = sshll.u32 %s2129_s7, 4  ;;  %s229_s11 = sshll.u32 %s2320_s4, 4  ;;  %s215_s8 = int_to_ptr.vmem [resolvable:$true] %s214_s8  ;;  %s230_s11 = int_to_ptr.hbm [resolvable:$true] %s229_s11 }
   0x9   : > { %p1994_p5 = pneg %p2189_p3  ;;  %s2130_s12 = smov 192  }
   0xa   : > { %s2131_s13 = smov 12   ;;  %s2132_s14 = smov [#allocation5]  }
   0xb   : > { %p1995_p6 = pnand %p2193_p4, %p1994_p5  ;;  %s231_s15 = sshll.u32 %s2132_s14, 4  ;;  %s232_s15 = int_to_ptr.vmem [resolvable:$true] %s231_s15 }
   0xc   : > { %270 = sbr.rel (%p2189_p3) target bundleno = 626 (0x272), region = 44 }
   0xd   : > { %1997 = dma.hbm_to_vmem [thread:$0]  (!%p1995_p6), %s213_s30, 6144, %s215_s8, [#allocation4], %s2130_s12, %s2130_s12, %s2131_s13  }
   0xe   : > { %2000 = dma.hbm_to_vmem [thread:$0]  (!%p1995_p6), %s230_s11, 6144, %s232_s15, [#allocation6], %s2130_s12, %s2130_s12, %s2131_s13  }
  0x11   : > { %2110 = dma.done.wait (%p2193_p4), [#allocation4], 6144  }
  0x12   : > { %2112 = vsyncadd (%p2193_p4), [#allocation4], 4294961152 }
  0x13   : > { %2114 = dma.done.wait (%p2193_p4), [#allocation6], 6144  }
  0x14   : > { %2116 = vsyncadd (%p2193_p4), [#allocation6], 4294961152  ;;  %v1578_v0 = vld [vmem:[#allocation3 + $0xa8] sm:$0xf]  ;;  %v1910_v1 = vld [vmem:[#allocation3 + $0xb0] sm:$0xf0] }
  0x15   : > { %v1674_v2 = vld [vmem:[#allocation3 + $0x168] sm:$0xf]  ;;  %v1579_v3 = vor.u32 %v1910_v1, %v1578_v0  ;;  %v1934_v4 = vld [vmem:[#allocation3 + $0x170] sm:$0xf0]  ;;  %v1909_v5 = vld [vmem:[#allocation3 + $0xac] sm:$0xf] }
  0x16   : > { %v1580_v6 = vld [vmem:[#allocation3 + $0xb4] sm:$0xf0]  ;;  %v1675_v7 = vor.u32 %v1934_v4, %v1674_v2  ;;  %v1933_v9 = vld [vmem:[#allocation3 + $0x16c] sm:$0xf]  ;;  %v1566_v11 = vld [vmem:[#allocation3 + $0x90] sm:$0xf] }
  0x17   : > { %v1583_v8 = vor.u32 %v1909_v5, %v1580_v6  ;;  %v1676_v10 = vld [vmem:[#allocation3 + $0x174] sm:$0xf0]  ;;  %695 = vmatpush.bf16.msra.mxu0 %v1579_v3  ;;  %v1907_v13 = vld [vmem:[#allocation3 + $0x98] sm:$0xf0]  ;;  %v1662_v14 = vld [vmem:[#allocation3 + $0x150] sm:$0xf] }
  0x18   : > { %v1679_v12 = vor.u32 %v1933_v9, %v1676_v10  ;;  %v1931_v15 = vld [vmem:[#allocation3 + $0x158] sm:$0xf0]  ;;  %713 = vmatpush.bf16.msra.mxu1 %v1675_v7  ;;  %v1567_v16 = vor.u32 %v1907_v13, %v1566_v11  ;;  %v1906_v18 = vld [vmem:[#allocation3 + $0x94] sm:$0xf]  ;;  %v1568_v19 = vld [vmem:[#allocation3 + $0x9c] sm:$0xf0] }
  0x19   : > { %731 = vmatpush.bf16.msra.mxu2 %v1583_v8  ;;  %v1663_v17 = vor.u32 %v1931_v15, %v1662_v14  ;;  %v1930_v20 = vld [vmem:[#allocation3 + $0x154] sm:$0xf]  ;;  %v1571_v21 = vor.u32 %v1906_v18, %v1568_v19  ;;  %v1664_v22 = vld [vmem:[#allocation3 + $0x15c] sm:$0xf0]  ;;  %v1554_v23 = vld [vmem:[#allocation3 + $0x78] sm:$0xf] }
  0x1a   : > { %749 = vmatpush.bf16.msra.mxu3 %v1679_v12  ;;  %v1904_v24 = vld [vmem:[#allocation3 + $0x80] sm:$0xf0]  ;;  %v1667_v25 = vor.u32 %v1930_v20, %v1664_v22  ;;  %v1650_v26 = vld [vmem:[#allocation3 + $0x138] sm:$0xf]  ;;  %v1903_v28 = vld [vmem:[#allocation3 + $0x7c] sm:$0xf] }
  0x1b   : > { %v1928_v27 = vld [vmem:[#allocation3 + $0x140] sm:$0xf0]  ;;  %696 = vmatpush.bf16.msra.mxu0 %v1567_v16  ;;  %v1555_v29 = vor.u32 %v1904_v24, %v1554_v23  ;;  %v1556_v30 = vld [vmem:[#allocation3 + $0x84] sm:$0xf0]  ;;  %v1927_v31 = vld [vmem:[#allocation3 + $0x13c] sm:$0xf] }
  0x1c   : > { %v1652_v32 = vld [vmem:[#allocation3 + $0x144] sm:$0xf0]  ;;  %714 = vmatpush.bf16.msra.mxu1 %v1663_v17  ;;  %v1651_v33 = vor.u32 %v1928_v27, %v1650_v26  ;;  %v1559_v34 = vor.u32 %v1903_v28, %v1556_v30  ;;  %v1542_v35 = vld [vmem:[#allocation3 + $0x60] sm:$0xf]  ;;  %v1901_v36 = vld [vmem:[#allocation3 + $0x68] sm:$0xf0] }
  0x1d   : > { %732 = vmatpush.bf16.msra.mxu2 %v1571_v21  ;;  %v1638_v37 = vld [vmem:[#allocation3 + $0x120] sm:$0xf]  ;;  %v1655_v38 = vor.u32 %v1927_v31, %v1652_v32  ;;  %v1925_v39 = vld [vmem:[#allocation3 + $0x128] sm:$0xf0]  ;;  %v1900_v40 = vld [vmem:[#allocation3 + $0x64] sm:$0xf]  ;;  %v1543_v44 = vor.u32 %v1901_v36, %v1542_v35 }
  0x1e   : > { %750 = vmatpush.bf16.msra.mxu3 %v1667_v25  ;;  %v1544_v41 = vld [vmem:[#allocation3 + $0x6c] sm:$0xf0]  ;;  %v1924_v42 = vld [vmem:[#allocation3 + $0x124] sm:$0xf]  ;;  %p319_p7 = scmp.lt.s32.totalorder %s2119_s21, 1  ;;  %v1639_v45 = vor.u32 %v1925_v39, %v1638_v37  ;;  %vm1284_vm0 = vcmask 1043456  }
  0x1f   : > { %v1640_v43 = vld [vmem:[#allocation3 + $0x12c] sm:$0xf0]  ;;  %697 = vmatpush.bf16.msra.mxu0 %v1555_v29  ;;  %v1547_v46 = vor.u32 %v1900_v40, %v1544_v41  ;;  %v1530_v47 = vld [vmem:[#allocation3 + $0x48] sm:$0xf]  ;;  %v1898_v48 = vld [vmem:[#allocation3 + $0x50] sm:$0xf0] }
  0x20   : > { %715 = vmatpush.bf16.msra.mxu1 %v1651_v33  ;;  %v1626_v49 = vld [vmem:[#allocation3 + $0x108] sm:$0xf]  ;;  %v1643_v50 = vor.u32 %v1924_v42, %v1640_v43  ;;  %v1922_v51 = vld [vmem:[#allocation3 + $0x110] sm:$0xf0]  ;;  %v1897_v52 = vld [vmem:[#allocation3 + $0x4c] sm:$0xf]  ;;  %v1531_v56 = vor.u32 %v1898_v48, %v1530_v47 }
  0x21   : > { %733 = vmatpush.bf16.msra.mxu2 %v1559_v34  ;;  %v1532_v53 = vld [vmem:[#allocation3 + $0x54] sm:$0xf0]  ;;  %v1921_v54 = vld [vmem:[#allocation3 + $0x10c] sm:$0xf]  ;;  %s2330_s21 = smov (!%p319_p7, %s2119_s21), 1  ;;  %v1627_v57 = vor.u32 %v1922_v51, %v1626_v49  ;;  %vm1264_vm2 = vcmask 195584  }
  0x22   : > { %751 = vmatpush.bf16.msra.mxu3 %v1655_v38  ;;  %v1628_v55 = vld [vmem:[#allocation3 + $0x114] sm:$0xf0]  ;;  %v1535_v58 = vor.u32 %v1897_v52, %v1532_v53  ;;  %v1518_v59 = vld [vmem:[#allocation3 + $0x30] sm:$0xf]  ;;  %v1895_v60 = vld [vmem:[#allocation3 + $0x38] sm:$0xf0] }
  0x23   : > { %698 = vmatpush.bf16.msra.mxu0 %v1543_v44  ;;  %v1614_v61 = vld [vmem:[#allocation3 + $0xf0] sm:$0xf]  ;;  %v1631_v62 = vor.u32 %v1921_v54, %v1628_v55  ;;  %v1919_v63 = vld [vmem:[#allocation3 + $0xf8] sm:$0xf0]  ;;  %v1894_v0 = vld [vmem:[#allocation3 + $0x34] sm:$0xf]  ;;  %v1519_v4 = vor.u32 %v1895_v60, %v1518_v59 }
  0x24   : > { %716 = vmatpush.bf16.msra.mxu1 %v1639_v45  ;;  %v1520_v1 = vld [vmem:[#allocation3 + $0x3c] sm:$0xf0]  ;;  %v1918_v2 = vld [vmem:[#allocation3 + $0xf4] sm:$0xf]  ;;  %s1985_s16 = smul.u32 24, %s2330_s21  ;;  %v1615_v5 = vor.u32 %v1919_v63, %v1614_v61  ;;  %s1884_s20 = sshll.u32 %s2330_s21, 3 }
  0x25   : > { %734 = vmatpush.bf16.msra.mxu2 %v1547_v46  ;;  %v1616_v3 = vld [vmem:[#allocation3 + $0xfc] sm:$0xf0]  ;;  %v1523_v6 = vor.u32 %v1894_v0, %v1520_v1  ;;  %v1506_v7 = vld [vmem:[#allocation3 + $0x18] sm:$0xf]  ;;  %v1892_v8 = vld [vmem:[#allocation3 + $0x20] sm:$0xf0]  ;;  %s332_s27 = scalar_lea.vmem %s2317_s1, %s1884_s20 }
  0x26   : > { %752 = vmatpush.bf16.msra.mxu3 %v1643_v50  ;;  %v1602_v9 = vld [vmem:[#allocation3 + $0xd8] sm:$0xf]  ;;  %v1619_v10 = vor.u32 %v1918_v2, %v1616_v3  ;;  %v1916_v11 = vld [vmem:[#allocation3 + $0xe0] sm:$0xf0]  ;;  %v1891_v12 = vld [vmem:[#allocation3 + $0x1c] sm:$0xf]  ;;  %v1507_v16 = vor.u32 %v1892_v8, %v1506_v7  ;;  %s2227_s19 = scalar_lea.vmem %s2316_s0, %s1985_s16 }
  0x27   : > { %699 = vmatpush.bf16.msra.mxu0 %v1531_v56  ;;  %v1508_v13 = vld [vmem:[#allocation3 + $0x24] sm:$0xf0]  ;;  %v1915_v14 = vld [vmem:[#allocation3 + $0xdc] sm:$0xf]  ;;  %v1494_v17 = vld [vmem:[#allocation3] sm:$0xf]  ;;  %v1603_v19 = vor.u32 %v1916_v11, %v1602_v9 }
  0x28   : > { %717 = vmatpush.bf16.msra.mxu1 %v1627_v57  ;;  %v1604_v15 = vld [vmem:[#allocation3 + $0xe4] sm:$0xf0]  ;;  %v1889_v18 = vld [vmem:[#allocation3 + $0x8] sm:$0xf0]  ;;  %v1511_v20 = vor.u32 %v1891_v12, %v1508_v13  ;;  %v1590_v21 = vld [vmem:[#allocation3 + $0xc0] sm:$0xf] }
  0x29   : > { %735 = vmatpush.bf16.msra.mxu2 %v1535_v58  ;;  %v1913_v22 = vld [vmem:[#allocation3 + $0xc8] sm:$0xf0]  ;;  %v1888_v23 = vld [vmem:[#allocation3 + $0x4] sm:$0xf]  ;;  %v1607_v24 = vor.u32 %v1915_v14, %v1604_v15  ;;  %v1496_v25 = vld [vmem:[#allocation3 + $0xc] sm:$0xf0]  ;;  %v1495_v31 = vor.u32 %v1889_v18, %v1494_v17 }
  0x2a   : > { %753 = vmatpush.bf16.msra.mxu3 %v1631_v62  ;;  %v1912_v26 = vld [vmem:[#allocation3 + $0xc4] sm:$0xf]  ;;  %v1592_v27 = vld [vmem:[#allocation3 + $0xcc] sm:$0xf0]  ;;  %v1486_v28 = vld [vmem:[%s2227_s19] sm:$0xf]  ;;  %v1591_v35 = vor.u32 %v1913_v22, %v1590_v21  ;;  %v1499_v36 = vor.u32 %v1888_v23, %v1496_v25 }
  0x2b   : > { %700 = vmatpush.bf16.msra.mxu0 %v1519_v4  ;;  %v1586_v29 = vld [vmem:[#allocation3 + $0xb0] sm:$0xf]  ;;  %v1911_v30 = vld [vmem:[#allocation3 + $0xb8] sm:$0xf0]  ;;  %v1887_v32 = vld [vmem:[%s2227_s19 + $0x4] sm:$0xf0]  ;;  %v1595_v39 = vor.u32 %v1912_v26, %v1592_v27 }
  0x2c   : > { %718 = vmatpush.bf16.msra.mxu1 %v1615_v5  ;;  %v1682_v33 = vld [vmem:[#allocation3 + $0x170] sm:$0xf]  ;;  %v1935_v34 = vld [vmem:[#allocation3 + $0x178] sm:$0xf0]  ;;  %v1886_v37 = vld [vmem:[%s2227_s19 + $0x4] sm:$0xf]  ;;  %v1587_v40 = vor.u32 %v1911_v30, %v1586_v29  ;;  %v2233_v44 = vor.u32 %v1887_v32, %v1486_v28 }
  0x2d   : > { %736 = vmatpush.bf16.msra.mxu2 %v1523_v6  ;;  %v1488_v38 = vld [vmem:[%s2227_s19 + $0x8] sm:$0xf0]  ;;  %v1959_v42 = vld [vmem:[#allocation5 + $0xb0] sm:$0xf0]  ;;  %v1574_v43 = vld [vmem:[#allocation3 + $0x98] sm:$0xf]  ;;  %v1683_v45 = vor.u32 %v1935_v34, %v1682_v33 }
  0x2e   : > { %754 = vmatpush.bf16.msra.mxu3 %v1619_v10  ;;  %v1770_v41 = vld [vmem:[#allocation5 + $0xa8] sm:$0xf]  ;;  %v1908_v46 = vld [vmem:[#allocation3 + $0xa0] sm:$0xf0]  ;;  %v1983_v48 = vld [vmem:[#allocation5 + $0x170] sm:$0xf0]  ;;  %v2235_v49 = vor.u32 %v1886_v37, %v1488_v38 }
  0x2f   : > { %701 = vmatpush.bf16.msra.mxu0 %v1507_v16  ;;  %v1866_v47 = vld [vmem:[#allocation5 + $0x168] sm:$0xf]  ;;  %v1670_v50 = vld [vmem:[#allocation3 + $0x158] sm:$0xf]  ;;  %v1932_v51 = vld [vmem:[#allocation3 + $0x160] sm:$0xf0]  ;;  %v1771_v52 = vor.u32 %v1959_v42, %v1770_v41  ;;  %v1575_v53 = vor.u32 %v1908_v46, %v1574_v43 }
  0x30   : > { %719 = vmatpush.bf16.msra.mxu1 %v1603_v19  ;;  %v1867_v54 = vor.u32 %v1983_v48, %v1866_v47  ;;  %v1758_v55 = vld [vmem:[#allocation5 + $0x90] sm:$0xf]  ;;  %v1956_v56 = vld [vmem:[#allocation5 + $0x98] sm:$0xf0]  ;;  %v1562_v57 = vld [vmem:[#allocation3 + $0x80] sm:$0xf]  ;;  %v1671_v58 = vor.u32 %v1932_v51, %v1670_v50 }
  0x31   : > { %737 = vmatpush.bf16.msra.mxu2 %v1511_v20  ;;  %v1905_v59 = vld [vmem:[#allocation3 + $0x88] sm:$0xf0]  ;;  %v1854_v60 = vld [vmem:[#allocation5 + $0x150] sm:$0xf]  ;;  %v1980_v61 = vld [vmem:[#allocation5 + $0x158] sm:$0xf0]  ;;  %v1759_v0 = vor.u32 %v1956_v56, %v1758_v55 }
  0x32   : > { %755 = vmatpush.bf16.msra.mxu3 %v1607_v24  ;;  %v1658_v62 = vld [vmem:[#allocation3 + $0x140] sm:$0xf]  ;;  %v1929_v63 = vld [vmem:[#allocation3 + $0x148] sm:$0xf0]  ;;  %v1563_v1 = vor.u32 %v1905_v59, %v1562_v57  ;;  %v1855_v2 = vor.u32 %v1980_v61, %v1854_v60  ;;  %v1746_v3 = vld [vmem:[#allocation5 + $0x78] sm:$0xf] }
  0x33   : > { %702 = vmatpush.bf16.msra.mxu0 %v1495_v31  ;;  %v1953_v4 = vld [vmem:[#allocation5 + $0x80] sm:$0xf0]  ;;  %v1550_v5 = vld [vmem:[#allocation3 + $0x68] sm:$0xf]  ;;  %v1659_v6 = vor.u32 %v1929_v63, %v1658_v62  ;;  %v1902_v7 = vld [vmem:[#allocation3 + $0x70] sm:$0xf0] }
  0x34   : > { %720 = vmatpush.bf16.msra.mxu1 %v1591_v35  ;;  %v1842_v8 = vld [vmem:[#allocation5 + $0x138] sm:$0xf]  ;;  %v1977_v9 = vld [vmem:[#allocation5 + $0x140] sm:$0xf0]  ;;  %v1646_v10 = vld [vmem:[#allocation3 + $0x128] sm:$0xf]  ;;  %v1747_v13 = vor.u32 %v1953_v4, %v1746_v3  ;;  %v1551_v14 = vor.u32 %v1902_v7, %v1550_v5 }
  0x35   : > { %738 = vmatpush.bf16.msra.mxu2 %v1499_v36  ;;  %v1926_v11 = vld [vmem:[#allocation3 + $0x130] sm:$0xf0]  ;;  %v349_v12 = vld [vmem:[%s2227_s19 + $0x10] sm:$0xff]  ;;  %v1843_v15 = vor.u32 %v1977_v9, %v1842_v8  ;;  %v1734_v16 = vld [vmem:[#allocation5 + $0x60] sm:$0xf]  ;;  %s1885_s8 = sshll.u32 %s2330_s21, 4 }
  0x36   : > { %756 = vmatpush.bf16.msra.mxu3 %v1595_v39  ;;  %703 = vmatmul.bf16.vlgmr.msra.gmra.mxu0 %v2233_v44  ;;  %v1950_v17 = vld [vmem:[#allocation5 + $0x68] sm:$0xf0]  ;;  %v1538_v18 = vld [vmem:[#allocation3 + $0x50] sm:$0xf]  ;;  %v1647_v19 = vor.u32 %v1926_v11, %v1646_v10  ;;  %v429_v20 = vunpack.c.l.b16 %v349_v12  ;;  %v1899_v21 = vld [vmem:[#allocation3 + $0x58] sm:$0xf0]  ;;  %v430_v24 = vunpack.c.h.b16 %v349_v12  ;;  %s341_s11 = scalar_lea.vmem %s2322_s6, %s1885_s8 }
  0x37   : > { %767 = vmatpush.bf16.msrb.mxu0 %v1587_v40  ;;  %721 = vmatmul.bf16.vlgmr.msra.gmra.mxu1 %v2235_v49  ;;  %v1830_v22 = vld [vmem:[#allocation5 + $0x120] sm:$0xf]  ;;  %v1974_v23 = vld [vmem:[#allocation5 + $0x128] sm:$0xf0]  ;;  %v1634_v25 = vld [vmem:[#allocation3 + $0x110] sm:$0xf]  ;;  %v1735_v27 = vor.u32 %v1950_v17, %v1734_v16  ;;  %v1539_v28 = vor.u32 %v1899_v21, %v1538_v18 }
  0x38   : > { %785 = vmatpush.bf16.msrb.mxu1 %v1683_v45  ;;  %739 = vmatmul.bf16.vlgmr.msra.gmra.mxu2 %v2233_v44  ;;  %v1923_v26 = vld [vmem:[#allocation3 + $0x118] sm:$0xf0]  ;;  %v1831_v29 = vor.u32 %v1974_v23, %v1830_v22  ;;  %v1722_v30 = vld [vmem:[#allocation5 + $0x48] sm:$0xf]  ;;  %v1947_v31 = vld [vmem:[#allocation5 + $0x50] sm:$0xf0]  ;;  %v2242_v33 = vpack.c.b16 %v429_v20, %v429_v20  ;;  %v2244_v38 = vpack.c.b16 %v430_v24, %v430_v24 }
  0x39   : > { %757 = vmatmul.bf16.vlgmr.msra.gmra.mxu3 %v2235_v49  ;;  %1157 = vmatpush.bf16.msrb.mxu2 %v1771_v52  ;;  %v1526_v32 = vld [vmem:[#allocation3 + $0x38] sm:$0xf]  ;;  %v1635_v34 = vor.u32 %v1923_v26, %v1634_v25  ;;  %v1896_v35 = vld [vmem:[#allocation3 + $0x40] sm:$0xf0]  ;;  %v1818_v36 = vld [vmem:[#allocation5 + $0x108] sm:$0xf]  ;;  %v1723_v41 = vor.u32 %v1947_v31, %v1722_v30 }
  0x3a   : > { %1170 = vmatpush.bf16.msrb.mxu3 %v1867_v54  ;;  %v1971_v37 = vld [vmem:[#allocation5 + $0x110] sm:$0xf0]  ;;  %v1622_v39 = vld [vmem:[#allocation3 + $0xf8] sm:$0xf]  ;;  %v1920_v40 = vld [vmem:[#allocation3 + $0x100] sm:$0xf0]  ;;  %v1527_v42 = vor.u32 %v1896_v35, %v1526_v32 }
  0x3b   : > { %768 = vmatpush.bf16.msrb.mxu0 %v1575_v53  ;;  %v1819_v43 = vor.u32 %v1971_v37, %v1818_v36  ;;  %v1710_v45 = vld [vmem:[#allocation5 + $0x30] sm:$0xf]  ;;  %v1944_v46 = vld [vmem:[#allocation5 + $0x38] sm:$0xf0]  ;;  %v1514_v47 = vld [vmem:[#allocation3 + $0x20] sm:$0xf]  ;;  %v1623_v48 = vor.u32 %v1920_v40, %v1622_v39 }
  0x3c   : > { %786 = vmatpush.bf16.msrb.mxu1 %v1671_v58  ;;  %v1893_v50 = vld [vmem:[#allocation3 + $0x28] sm:$0xf0]  ;;  %v1806_v51 = vld [vmem:[#allocation5 + $0xf0] sm:$0xf]  ;;  %v1968_v52 = vld [vmem:[#allocation5 + $0xf8] sm:$0xf0]  ;;  %v1711_v55 = vor.u32 %v1944_v46, %v1710_v45 }
  0x3d   : > { %1158 = vmatpush.bf16.msrb.mxu2 %v1759_v0  ;;  %v1610_v53 = vld [vmem:[#allocation3 + $0xe0] sm:$0xf]  ;;  %v1917_v54 = vld [vmem:[#allocation3 + $0xe8] sm:$0xf0]  ;;  %v1515_v56 = vor.u32 %v1893_v50, %v1514_v47  ;;  %v1807_v57 = vor.u32 %v1968_v52, %v1806_v51  ;;  %v1698_v58 = vld [vmem:[#allocation5 + $0x18] sm:$0xf] }
  0x3e   : > { %1171 = vmatpush.bf16.msrb.mxu3 %v1855_v2  ;;  %v1941_v59 = vld [vmem:[#allocation5 + $0x20] sm:$0xf0]  ;;  %v1502_v60 = vld [vmem:[#allocation3 + $0x8] sm:$0xf]  ;;  %v1611_v61 = vor.u32 %v1917_v54, %v1610_v53  ;;  %v1890_v62 = vld [vmem:[#allocation3 + $0x10] sm:$0xf0] }
  0x3f   : > { %769 = vmatpush.bf16.msrb.mxu0 %v1563_v1  ;;  %v1794_v63 = vld [vmem:[#allocation5 + $0xd8] sm:$0xf]  ;;  %v1965_v0 = vld [vmem:[#allocation5 + $0xe0] sm:$0xf0]  ;;  %v1598_v1 = vld [vmem:[#allocation3 + $0xc8] sm:$0xf]  ;;  %v1699_v3 = vor.u32 %v1941_v59, %v1698_v58  ;;  %v1503_v5 = vor.u32 %v1890_v62, %v1502_v60 }
  0x40   : > { %787 = vmatpush.bf16.msrb.mxu1 %v1659_v6  ;;  %v1914_v2 = vld [vmem:[#allocation3 + $0xd0] sm:$0xf0]  ;;  %v821_v4 = vld [vmem:[%s332_s27] sm:$0xff]  ;;  %v1795_v6 = vor.u32 %v1965_v0, %v1794_v63  ;;  %v1938_v8 = vld [vmem:[#allocation5 + $0x8] sm:$0xf0] }
  0x41   : > { %1159 = vmatpush.bf16.msrb.mxu2 %v1747_v13  ;;  %v1686_v7 = vld [vmem:[#allocation5] sm:$0xf]  ;;  %v1599_v9 = vor.u32 %v1914_v2, %v1598_v1  ;;  %v1962_v11 = vld [vmem:[#allocation5 + $0xc8] sm:$0xf0]  ;;  %v895_v12 = vunpack.c.l.b16 %v821_v4  ;;  %v1955_v21 = vld [vmem:[#allocation5 + $0x94] sm:$0xf] }
  0x42   : > { %1172 = vmatpush.bf16.msrb.mxu3 %v1843_v15  ;;  %v1782_v10 = vld [vmem:[#allocation5 + $0xc0] sm:$0xf]  ;;  %v1687_v13 = vor.u32 %v1938_v8, %v1686_v7  ;;  %v1958_v18 = vld [vmem:[#allocation5 + $0xac] sm:$0xf]  ;;  %v1952_v24 = vld [vmem:[#allocation5 + $0x7c] sm:$0xf] }
  0x43   : > { %770 = vmatpush.bf16.msrb.mxu0 %v1551_v14  ;;  %v896_v14 = vunpack.c.h.b16 %v821_v4  ;;  %v1783_v15 = vor.u32 %v1962_v11, %v1782_v10  ;;  %v2254_v16 = vpack.c.b16 %v895_v12, %v895_v12  ;;  %v1760_v22 = vld [vmem:[#allocation5 + $0x9c] sm:$0xf0]  ;;  %v1868_v26 = vld [vmem:[#allocation5 + $0x174] sm:$0xf0]  ;;  %v1979_v31 = vld [vmem:[#allocation5 + $0x154] sm:$0xf] }
  0x44   : > { %788 = vmatpush.bf16.msrb.mxu1 %v1647_v19  ;;  %v1772_v19 = vld [vmem:[#allocation5 + $0xb4] sm:$0xf0]  ;;  %v1763_v23 = vor.u32 %v1955_v21, %v1760_v22  ;;  %v1856_v32 = vld [vmem:[#allocation5 + $0x15c] sm:$0xf0]  ;;  %v1976_v37 = vld [vmem:[#allocation5 + $0x13c] sm:$0xf] }
  0x45   : > { %1160 = vmatpush.bf16.msrb.mxu2 %v1735_v27  ;;  %v2256_v17 = vpack.c.b16 %v896_v14, %v896_v14  ;;  %v1775_v20 = vor.u32 %v1958_v18, %v1772_v19  ;;  %v1724_v35 = vld [vmem:[#allocation5 + $0x54] sm:$0xf0]  ;;  %v1943_v40 = vld [vmem:[#allocation5 + $0x34] sm:$0xf]  ;;  %v1832_v45 = vld [vmem:[#allocation5 + $0x12c] sm:$0xf0] }
  0x46   : > { %1173 = vmatpush.bf16.msrb.mxu3 %v1831_v29  ;;  %708 = vmatmul.bf16.gmra.mxu0 %v2242_v33  ;;  %v1736_v29 = vld [vmem:[#allocation5 + $0x6c] sm:$0xf0]  ;;  %v1940_v47 = vld [vmem:[#allocation5 + $0x1c] sm:$0xf]  ;;  %v1970_v51 = vld [vmem:[#allocation5 + $0x10c] sm:$0xf] }
  0x47   : > { %771 = vmatpush.bf16.msrb.mxu0 %v1539_v28  ;;  %726 = vmatmul.bf16.gmra.mxu1 %v2244_v38  ;;  %v1949_v28 = vld [vmem:[#allocation5 + $0x64] sm:$0xf]  ;;  %v1820_v52 = vld [vmem:[#allocation5 + $0x114] sm:$0xf0]  ;;  %v1808_v58 = vld [vmem:[#allocation5 + $0xfc] sm:$0xf0] }
  0x48   : > { %789 = vmatpush.bf16.msrb.mxu1 %v1635_v34  ;;  %744 = vmatmul.bf16.gmra.mxu2 %v2242_v33  ;;  %v1739_v30 = vor.u32 %v1949_v28, %v1736_v29  ;;  %v1946_v34 = vld [vmem:[#allocation5 + $0x4c] sm:$0xf]  ;;  %v1823_v53 = vor.u32 %v1970_v51, %v1820_v52  ;;  %v1937_v54 = vld [vmem:[#allocation5 + $0x4] sm:$0xf]  ;;  %v1964_v60 = vld [vmem:[#allocation5 + $0xdc] sm:$0xf] }
  0x49   : > { %762 = vmatmul.bf16.gmra.mxu3 %v2244_v38  ;;  %1161 = vmatpush.bf16.msrb.mxu2 %v1723_v41  ;;  %v1727_v36 = vor.u32 %v1946_v34, %v1724_v35  ;;  %v1712_v41 = vld [vmem:[#allocation5 + $0x3c] sm:$0xf0]  ;;  %v2268_v63 = vld [vmem:[%s2319_s3] sm:$0x7]  ;;  %v1961_v0 = vld [vmem:[#allocation5 + $0xc4] sm:$0xf] }
  0x4a   : > { %1174 = vmatpush.bf16.msrb.mxu3 %v1819_v43  ;;  %v1973_v43 = vld [vmem:[#allocation5 + $0x124] sm:$0xf]  ;;  %v1784_v1 = vld [vmem:[#allocation5 + $0xcc] sm:$0xf0]  ;;  %v417_v7 = vperm.slane %v2268_v63, 1 }
  0x4b   : > { %772 = vmatpush.bf16.msrb.mxu0 %v1527_v42  ;;  %v1715_v42 = vor.u32 %v1943_v40, %v1712_v41  ;;  %v1835_v46 = vor.u32 %v1973_v43, %v1832_v45  ;;  %v1787_v2 = vor.u32 %v1961_v0, %v1784_v1  ;;  %v1778_v14 = vld [vmem:[#allocation5 + $0xb0] sm:$0xf]  ;;  %v1766_v21 = vld [vmem:[#allocation5 + $0x98] sm:$0xf]  ;;  %v1957_v22 = vld [vmem:[#allocation5 + $0xa0] sm:$0xf0] }
  0x4c   : > { %790 = vmatpush.bf16.msrb.mxu1 %v1623_v48  ;;  %v1700_v48 = vld [vmem:[#allocation5 + $0x24] sm:$0xf0]  ;;  %v1754_v28 = vld [vmem:[#allocation5 + $0x80] sm:$0xf]  ;;  %v1954_v29 = vld [vmem:[#allocation5 + $0x88] sm:$0xf0] }
  0x4d   : > { %1162 = vmatpush.bf16.msrb.mxu2 %v1711_v55  ;;  %v1703_v50 = vor.u32 %v1940_v47, %v1700_v48  ;;  %v1688_v55 = vld [vmem:[#allocation5 + $0xc] sm:$0xf0]  ;;  %v1742_v35 = vld [vmem:[#allocation5 + $0x68] sm:$0xf]  ;;  %v1948_v40 = vld [vmem:[#allocation5 + $0x58] sm:$0xf0] }
  0x4e   : > { %1175 = vmatpush.bf16.msrb.mxu3 %v1807_v57  ;;  %v1967_v57 = vld [vmem:[#allocation5 + $0xf4] sm:$0xf]  ;;  %v1718_v48 = vld [vmem:[#allocation5 + $0x38] sm:$0xf] }
  0x4f   : > { %773 = vmatpush.bf16.msrb.mxu0 %v1515_v56  ;;  %v1691_v56 = vor.u32 %v1937_v54, %v1688_v55  ;;  %v1811_v59 = vor.u32 %v1967_v57, %v1808_v58  ;;  %v418_v54 = vperm.slane %v2268_v63, 2  ;;  %v1706_v55 = vld [vmem:[#allocation5 + $0x20] sm:$0xf] }
  0x50   : > { %791 = vmatpush.bf16.msrb.mxu1 %v1611_v61  ;;  %v1796_v61 = vld [vmem:[#allocation5 + $0xe4] sm:$0xf0] }
  0x51   : > { %1163 = vmatpush.bf16.msrb.mxu2 %v1699_v3  ;;  %v1799_v62 = vor.u32 %v1964_v60, %v1796_v61  ;;  %v416_v3 = vperm.slane %v2268_v63, 0 }
  0x52   : > { %1176 = vmatpush.bf16.msrb.mxu3 %v1795_v6 }
  0x53   : > { %774 = vmatpush.bf16.msrb.mxu0 %v1503_v5 }
  0x54   : > { %792 = vmatpush.bf16.msrb.mxu1 %v1599_v9 }
  0x55   : > { %1164 = vmatpush.bf16.msrb.mxu2 %v1687_v13 }
  0x56   : > { %1177 = vmatpush.bf16.msrb.mxu3 %v1783_v15  ;;  %775 = vmatmul.bf16.vlgmr.msrb.gmra.mxu0 %v2233_v44  ;;  %v1748_v44 = vld [vmem:[#allocation5 + $0x84] sm:$0xf0]  ;;  %v1960_v15 = vld [vmem:[#allocation5 + $0xb8] sm:$0xf0] }
  0x57   : > { %793 = vmatmul.bf16.vlgmr.msrb.gmra.mxu1 %v2235_v49  ;;  %1183 = vmatpush.bf16.msra.mxu0 %v1775_v20  ;;  %v1751_v25 = vor.u32 %v1952_v24, %v1748_v44  ;;  %v1982_v49 = vld [vmem:[#allocation5 + $0x16c] sm:$0xf]  ;;  %v1779_v19 = vor.u32 %v1960_v15, %v1778_v14  ;;  %v1767_v24 = vor.u32 %v1957_v22, %v1766_v21 }
  0x58   : > { %1165 = vmatmul.bf16.vlgmr.msrb.gmra.mxu2 %v2254_v16  ;;  %v1871_v27 = vor.u32 %v1982_v49, %v1868_v26 }
  0x59   : > { %1178 = vmatmul.bf16.vlgmr.msrb.gmra.mxu3 %v2256_v17  ;;  %1209 = vmatpush.bf16.msra.mxu2 %v1779_v19 }
  0x5a   : > { %1196 = vmatpush.bf16.msra.mxu1 %v1871_v27 }
  0x5b   : > { %1184 = vmatpush.bf16.msra.mxu0 %v1763_v23 }
  0x5d   : > { %1210 = vmatpush.bf16.msra.mxu2 %v1767_v24 }
  0x5f   : > { %1185 = vmatpush.bf16.msra.mxu0 %v1751_v25 }
  0x63   : > { %1186 = vmatpush.bf16.msra.mxu0 %v1739_v30 }
  0x66   : > { %780 = vmatmul.bf16.gmra.mxu0 %v2242_v33  ;;  %v1859_v33 = vor.u32 %v1979_v31, %v1856_v32  ;;  %v1755_v32 = vor.u32 %v1954_v29, %v1754_v28 }
  0x67   : > { %798 = vmatmul.bf16.gmra.mxu1 %v2244_v38  ;;  %v1844_v38 = vld [vmem:[#allocation5 + $0x144] sm:$0xf0]  ;;  %1187 = vmatpush.bf16.msra.mxu0 %v1727_v36  ;;  %v1951_v36 = vld [vmem:[#allocation5 + $0x70] sm:$0xf0] }
  0x68   : > { %1197 = vmatpush.bf16.msra.mxu1 %v1859_v33  ;;  %v1847_v39 = vor.u32 %v1976_v37, %v1844_v38  ;;  %1211 = vmatpush.bf16.msra.mxu2 %v1755_v32  ;;  %v1743_v37 = vor.u32 %v1951_v36, %v1742_v35 }
  0x6b   : > { %1188 = vmatpush.bf16.msra.mxu0 %v1715_v42 }
  0x6c   : > { %1198 = vmatpush.bf16.msra.mxu1 %v1847_v39  ;;  %v1730_v39 = vld [vmem:[#allocation5 + $0x50] sm:$0xf]  ;;  %1212 = vmatpush.bf16.msra.mxu2 %v1743_v37 }
  0x6f   : > { %1189 = vmatpush.bf16.msra.mxu0 %v1703_v50  ;;  %v1945_v50 = vld [vmem:[#allocation5 + $0x40] sm:$0xf0] }
  0x70   : > { %1199 = vmatpush.bf16.msra.mxu1 %v1835_v46  ;;  %v1731_v46 = vor.u32 %v1948_v40, %v1730_v39 }
  0x72   : > { %1213 = vmatpush.bf16.msra.mxu2 %v1731_v46 }
  0x73   : > { %1190 = vmatpush.bf16.msra.mxu0 %v1691_v56  ;;  %v1942_v56 = vld [vmem:[#allocation5 + $0x28] sm:$0xf0] }
  0x74   : > { %1200 = vmatpush.bf16.msra.mxu1 %v1823_v53  ;;  %v1719_v53 = vor.u32 %v1945_v50, %v1718_v48 }
  0x76   : > { %1191 = vmatmul.bf16.vlgmr.msra.gmra.mxu0 %v2254_v16  ;;  %1214 = vmatpush.bf16.msra.mxu2 %v1719_v53 }
  0x78   : > { %1201 = vmatpush.bf16.msra.mxu1 %v1811_v59 }
  0x7c   : > { %1202 = vmatpush.bf16.msra.mxu1 %v1799_v62  ;;  %v1707_v62 = vor.u32 %v1942_v56, %v1706_v55 }
  0x7e   : > { %1215 = vmatpush.bf16.msra.mxu2 %v1707_v62 }
  0x80   : > { %1203 = vmatpush.bf16.msra.mxu1 %v1787_v2  ;;  %v2286_v2 = vld [vmem:[%s2321_s5] sm:$0x7] }
  0x83   : > { %1204 = vmatmul.bf16.vlgmr.msra.gmra.mxu1 %v2256_v17 }
  0xb3   : > { %v704_v4 = vpop.f32.mrf.mxu0 }
  0xb4   : > { %v722_v5 = vpop.f32.mrf.mxu1  ;;  %v705_v6 = vadd.f32 %v704_v4, %v416_v3  ;;  %v1939_v4 = vld [vmem:[#allocation5 + $0x10] sm:$0xf0] }
  0xb6   : > { %v723_v9 = vadd.f32 %v722_v5, %v705_v6  ;;  %v888_v5 = vperm.slane %v2286_v2, 0 }
  0xbb   : > { %v740_v8 = vpop.f32.mrf.mxu2  ;;  %v706_v12 = vpop.f32.mrf.mxu0 }
  0xbc   : > { %v741_v10 = vadd.f32 %v740_v8, %v417_v7  ;;  %v758_v11 = vpop.f32.mrf.mxu3  ;;  %v724_v13 = vpop.f32.mrf.mxu1  ;;  %v707_v23 = vadd.f32 %v706_v12, %v416_v3 }
  0xbe   : > { %v759_v18 = vadd.f32 %v758_v11, %v741_v10  ;;  %v725_v30 = vadd.f32 %v724_v13, %v707_v23 }
  0xc0   : > { %v2273_v20 = vpack.c.bf16 %v759_v18, %v723_v9 }
  0xc2   : > { %809 = vst [vmem:[#allocation2] sm:$0xff] %v2273_v20 }
  0xc3   : > { %v742_v44 = vpop.f32.mrf.mxu2  ;;  %v709_v26 = vpop.f32.mrf.mxu0 }
  0xc4   : > { %v743_v25 = vadd.f32 %v742_v44, %v417_v7  ;;  %v760_v49 = vpop.f32.mrf.mxu3  ;;  %v727_v27 = vpop.f32.mrf.mxu1  ;;  %v710_v34 = vadd.f32 %v709_v26, %v416_v3  ;;  %v1694_v3 = vld [vmem:[#allocation5 + $0x8] sm:$0xf] }
  0xc5   : > { %v1695_v6 = vor.u32 %v1939_v4, %v1694_v3  ;;  %v1862_v3 = vld [vmem:[#allocation5 + $0x158] sm:$0xf] }
  0xc6   : > { %v761_v31 = vadd.f32 %v760_v49, %v743_v25  ;;  %v728_v41 = vadd.f32 %v727_v27, %v710_v34 }
  0xc7   : > { %1216 = vmatpush.bf16.msra.mxu2 %v1695_v6  ;;  %v1850_v6 = vld [vmem:[#allocation5 + $0x140] sm:$0xf] }
  0xc8   : > { %v2276_v33 = vpack.c.bf16 %v761_v31, %v725_v30 }
  0xc9   : > { %v1878_v10 = vld [vmem:[#allocation2] sm:$0xf] }
  0xca   : > { %811 = vst [vmem:[#allocation2 + $0xc] sm:$0xff] %v2276_v33  ;;  %1217 = vmatmul.bf16.vlgmr.msra.gmra.mxu2 %v2254_v16  ;;  %v1280_v39 = vrot.slane %v2276_v33, 4 }
  0xcb   : > { %v745_v38 = vpop.f32.mrf.mxu2  ;;  %v711_v45 = vpop.f32.mrf.mxu0 }
  0xcc   : > { %v746_v42 = vadd.f32 %v745_v38, %v417_v7  ;;  %v763_v43 = vpop.f32.mrf.mxu3  ;;  %v729_v47 = vpop.f32.mrf.mxu1 }
  0xce   : > { %v764_v51 = vadd.f32 %v763_v43, %v746_v42  ;;  %v1278_v43 = vrot.slane %v2273_v20, 4 }
  0xd0   : > { %v2279_v52 = vpack.c.bf16 %v764_v51, %v728_v41 }
  0xd1   : > { %v1936_v8 = vld [vmem:[#allocation2 + $0x8] sm:$0xf0] }
  0xd2   : > { %v1242_v57 = vunpack.c.l.b16 %v2279_v52  ;;  %v1879_v14 = vor.u32 %v1936_v8, %v1878_v10  ;;  %v1282_v16 = vrot.slane %v2279_v52, 4  ;;  %v1975_v10 = vld [vmem:[#allocation5 + $0x130] sm:$0xf0] }
  0xd3   : > { %v747_v58 = vpop.f32.mrf.mxu2  ;;  %v776_v60 = vpop.f32.mrf.mxu0 }
  0xd4   : > { %v765_v59 = vpop.f32.mrf.mxu3  ;;  %v1244_v61 = vpack.c.b16 %v1242_v57, %v1242_v57  ;;  %v777_v0 = vadd.f32 %v776_v60, %v418_v54  ;;  %v794_v1 = vpop.f32.mrf.mxu1  ;;  %v889_v58 = vperm.slane %v2286_v2, 1 }
  0xd6   : > { %1253 = vmatpush.bf16.xpose.msrb.mxu0 %v1244_v61  ;;  %v795_v63 = vadd.f32 %v794_v1, %v777_v0  ;;  %v1874_v0 = vld [vmem:[#allocation5 + $0x170] sm:$0xf]  ;;  %v1984_v1 = vld [vmem:[#allocation5 + $0x178] sm:$0xf0] }
  0xd7   : > { %v1875_v4 = vor.u32 %v1984_v1, %v1874_v0 }
  0xd8   : > { %v804_v7 = vpack.c.bf16 %v795_v63, %v795_v63  ;;  %v1981_v63 = vld [vmem:[#allocation5 + $0x160] sm:$0xf0] }
  0xd9   : > { %1222 = vmatpush.bf16.msra.mxu3 %v1875_v4 }
  0xda   : > { %810 = vst [vmem:[#allocation2 + $0x8] sm:$0xf] %v804_v7  ;;  %v1978_v7 = vld [vmem:[#allocation5 + $0x148] sm:$0xf0] }
  0xdb   : > { %v1166_v9 = vpop.f32.mrf.mxu2  ;;  %v778_v11 = vpop.f32.mrf.mxu0  ;;  %v1851_v8 = vor.u32 %v1978_v7, %v1850_v6 }
  0xdc   : > { %v1167_v12 = vadd.f32 %v1166_v9, %v888_v5  ;;  %v1179_v13 = vpop.f32.mrf.mxu3  ;;  %v779_v15 = vadd.f32 %v778_v11, %v418_v54  ;;  %v796_v18 = vpop.f32.mrf.mxu1  ;;  %v1863_v5 = vor.u32 %v1981_v63, %v1862_v3  ;;  %v1838_v9 = vld [vmem:[#allocation5 + $0x128] sm:$0xf] }
  0xdd   : > { %v1839_v11 = vor.u32 %v1975_v10, %v1838_v9 }
  0xde   : > { %v1180_v19 = vadd.f32 %v1179_v13, %v1167_v12  ;;  %1254 = vmatpush.bf16.xpose.msrb.mxu0 %v1879_v14  ;;  %v797_v21 = vadd.f32 %v796_v18, %v779_v15  ;;  %1223 = vmatpush.bf16.msra.mxu3 %v1863_v5  ;;  %v1826_v12 = vld [vmem:[#allocation5 + $0x110] sm:$0xf]  ;;  %v1972_v13 = vld [vmem:[#allocation5 + $0x118] sm:$0xf0]  ;;  %v1260_v14 = vlaneseq  ;;  %v1814_v18 = vld [vmem:[#allocation5 + $0xf8] sm:$0xf] }
  0xdf   : > { %v1827_v15 = vor.u32 %v1972_v13, %v1826_v12 }
  0xe0   : > { %v1235_v22 = vmul.f32 0.088388346, %v1180_v19  ;;  %v806_v23 = vpack.c.bf16 %v797_v21, %v797_v21  ;;  %v1969_v19 = vld [vmem:[#allocation5 + $0x100] sm:$0xf0]  ;;  %v1261_v21 = vand.u32 127, %v1260_v14 }
  0xe1   : > { %v816_v34 = vld [vmem:[#allocation2 + $0x8] sm:$0xf] }
  0xe2   : > { %v1236_v24 = vpack.c.bf16 %v1235_v22, %v1235_v22  ;;  %812 = vst [vmem:[#allocation2 + $0x14] sm:$0xf] %v806_v23  ;;  %v1279_v38 = vrot.slane %v816_v34, 4  ;;  %1224 = vmatpush.bf16.msra.mxu3 %v1851_v8  ;;  %v1815_v22 = vor.u32 %v1969_v19, %v1814_v18  ;;  %v1802_v23 = vld [vmem:[#allocation5 + $0xe0] sm:$0xf]  ;;  %vm1262_vm1 = vcmp.lt.s32.totalorder %v1261_v21, 21 }
  0xe3   : > { %v1168_v44 = vpop.f32.mrf.mxu2  ;;  %v781_v25 = vpop.f32.mrf.mxu0 }
  0xe4   : > { %v1181_v49 = vpop.f32.mrf.mxu3  ;;  %v782_v26 = vadd.f32 %v781_v25, %v418_v54  ;;  %v799_v27 = vpop.f32.mrf.mxu1  ;;  %v1285_v48 = vsel %vm1284_vm0, %v1278_v43, %v1279_v38 }
  0xe5   : > { %1255 = vmatmul.bf16.vlgmr.msrb.gmra.mxu0 %v1236_v24  ;;  %v1288_v52 = vunpack.c.l.b16 %v1285_v48  ;;  %v1289_v55 = vunpack.c.h.b16 %v1285_v48  ;;  %v1966_v24 = vld [vmem:[#allocation5 + $0xe8] sm:$0xf0]  ;;  %v1790_v49 = vld [vmem:[#allocation5 + $0xc8] sm:$0xf] }
  0xe6   : > { %v800_v28 = vadd.f32 %v799_v27, %v782_v26  ;;  %1225 = vmatpush.bf16.msra.mxu3 %v1839_v11  ;;  %v1803_v44 = vor.u32 %v1966_v24, %v1802_v23  ;;  %v1963_v26 = vld [vmem:[#allocation5 + $0xd0] sm:$0xf0] }
  0xe8   : > { %v808_v29 = vpack.c.bf16 %v800_v28, %v800_v28 }
  0xe9   : > { %v818_v32 = vld [vmem:[#allocation2 + $0x14] sm:$0xf] }
  0xea   : > { %814 = vst [vmem:[#allocation2 + $0x20] sm:$0xf] %v808_v29  ;;  %v1281_v36 = vrot.slane %v818_v32, 4  ;;  %1226 = vmatpush.bf16.msra.mxu3 %v1827_v15  ;;  %v1791_v29 = vor.u32 %v1963_v26, %v1790_v49 }
  0xeb   : > { %v783_v30 = vpop.f32.mrf.mxu0 }
  0xec   : > { %v801_v31 = vpop.f32.mrf.mxu1  ;;  %v1286_v45 = vsel %vm1284_vm0, %v1280_v39, %v1281_v36 }
  0xed   : > { %v1290_v50 = vunpack.c.l.b16 %v1286_v45  ;;  %v1291_v51 = vunpack.c.h.b16 %v1286_v45 }
  0xee   : > { %1227 = vmatpush.bf16.msra.mxu3 %v1815_v22 }
  0xef   : > { %v1294_v56 = vpack.c.b16 %v1290_v50, %v1288_v52  ;;  %v1295_v57 = vpack.c.b16 %v1291_v51, %v1289_v55 }
  0xf1   : > { %v820_v35 = vld [vmem:[#allocation2 + $0x20] sm:$0xf] }
  0xf2   : > { %v1283_v37 = vrot.slane %v820_v35, 4  ;;  %1228 = vmatpush.bf16.msra.mxu3 %v1803_v44 }
  0xf3   : > { %v1192_v33 = vpop.f32.mrf.mxu0 }
  0xf4   : > { %v1287_v40 = vsel %vm1284_vm0, %v1282_v16, %v1283_v37  ;;  %v1193_v20 = vadd.f32 %v1192_v33, %v889_v58 }
  0xf5   : > { %v1292_v41 = vunpack.c.l.b16 %v1287_v40  ;;  %v1293_v42 = vunpack.c.h.b16 %v1287_v40 }
  0xf6   : > { %1229 = vmatpush.bf16.msra.mxu3 %v1791_v29 }
  0xf7   : > { %v1296_v46 = vpack.c.b16 %v1292_v41, %v1292_v41  ;;  %v1297_v47 = vpack.c.b16 %v1293_v42, %v1293_v42 }
  0xf9   : > { %v1305_v53 = vsel %vm1284_vm0, %v1296_v46, 0  ;;  %v1308_v54 = vsel %vm1284_vm0, %v1297_v47, 0  ;;  %1230 = vmatmul.bf16.vlgmr.msra.gmra.mxu3 %v2256_v17  ;;  %v890_v17 = vperm.slane %v2286_v2, 2 }
  0xfa   : > { %1316 = vmatpush.bf16.msrb.mxu1 %v1305_v53  ;;  %1329 = vmatpush.bf16.msrb.mxu2 %v1308_v54 }
  0xfb   : > { %v1194_v59 = vpop.f32.mrf.mxu0 }
  0xfe   : > { %1317 = vmatpush.bf16.msrb.mxu1 %v1294_v56  ;;  %1330 = vmatpush.bf16.msrb.mxu2 %v1295_v57 }
 0x100   : > { %v1205_v60 = vpop.f32.mrf.mxu1 }
 0x101   : > { %v2294_v61 = vadd.f32 %v1205_v60, %v1193_v20 }
 0x108   : > { %v1207_v62 = vpop.f32.mrf.mxu1 }
 0x14d   : > { %v1218_v31 = vpop.f32.mrf.mxu2 }
 0x14e   : > { %v1219_v46 = vadd.f32 %v1218_v31, %v890_v17 }
 0x155   : > { %v1220_v32 = vpop.f32.mrf.mxu2 }
 0x162   : > { %v1256_v25 = vpop.f32.mrf.mxu0 }
 0x163   : > { %v1263_v27 = vsel %vm1262_vm1, %v1256_v25, -1e+30 }
 0x164   : > { %v1265_v28 = vsel %vm1264_vm2, %v1263_v27, -inf }
 0x165   : > { %1266 = vmax.xlane.f32.xlu0 %v1265_v28 }
 0x16a   : > { %v1258_v30 = vpop.f32.mrf.mxu0 }
 0x17c   : > { %v1231_v39 = vpop.f32.mrf.mxu3 }
 0x17d   : > { %v1232_v50 = vadd.f32 %v1231_v39, %v1219_v46 }
 0x184   : > { %v1233_v40 = vpop.f32.mrf.mxu3 }
 0x1d8   : > { %v1267_v34 = vpop.xlane.xlu0 %1266 }
 0x1d9   : > { %v1268_v35 = vsub.f32 %v1263_v27, %v1267_v34 }
 0x1db   : > { %v1269_v36 = vmul.f32 1.442695, %v1268_v35 }
 0x1dd   : > { %2033 = vpow2.f32 %v1269_v36 }
 0x1e3   : > { %v2034_v16 = vpop.eup %2033 }
 0x1e4   : > { %v1274_v37 = vpack.c.bf16 %v2034_v16, %v2034_v16  ;;  %v1271_v38 = vsel %vm1264_vm2, %v2034_v16, 0.0 }
 0x1e5   : > { %1272 = vadd.xlane.f32.xlu0 %v1271_v38 }
 0x1e6   : > { %1880 = vmatmul.msk.bf16.vlgmr.msrb.gmra.mxu1 %vm1264_vm2, %v1274_v37  ;;  %1881 = vmatmul.msk.bf16.vlgmr.msrb.gmra.mxu2 %vm1264_vm2, %v1274_v37 }
 0x258   : > { %v1273_v41 = vpop.xlane.xlu0 %1272 }
 0x259   : > { %2035 = vrcp.f32 %v1273_v41 }
 0x25f   : > { %v2036_v42 = vpop.eup %2035 }
 0x263   : > { %v1319_v43 = vpop.f32.mrf.mxu1 }
 0x264   : > { %v1337_v45 = vmul.f32 %v2036_v42, %v1319_v43 }
 0x266   : > { %v1339_v47 = vadd.f32 %v1337_v45, %v2294_v61 }
 0x268   : > { %1341 = vst [vmem:[%s341_s11] sm:$0xff] %v1339_v47 }
 0x269   : > { %v1332_v48 = vpop.f32.mrf.mxu2 }
 0x26a   : > { %v1338_v51 = vmul.f32 %v2036_v42, %v1332_v48 }
 0x26b   : > { %v1321_v53 = vpop.f32.mrf.mxu1 }
 0x26c   : > { %v1340_v54 = vadd.f32 %v1338_v51, %v1232_v50 }
 0x26e   : > { %1342 = vst [vmem:[%s341_s11 + $0x8] sm:$0xff] %v1340_v54 }
 0x271   : > { %v1334_v52 = vpop.f32.mrf.mxu2 }
 0x272 PF: > { %s18_s23 = sadd.s32 1, %s2127_s23   ;;  %s2325_s21 = smov %s2123_s22 }
 0x273   : > { %p15_p8 = scmp.ge.s32.totalorder %s18_s23, 4   ;;  %s2326_s22 = smov %s2328_s25 }
 0x275   :  { %17 = sbr.rel (!%p15_p8) target bundleno = 3 (0x3), region = 90 }
 0x27a   :  { %1372 = vsyncpa [#allocation4], 1 }
 0x27b   :  { %1374 = vsyncpa [#allocation4 + $0x1], 1 }
 0x27c   :  { %1375 = vsyncpa [#allocation6], 1 }

</bundles_post_ra>
